<compile_context>
chip_gen: v7x
topology: tpu7x:2x2x1
jax: 0.10.0
libtpu: 0.0.40
codegen_flags: <defaults>
</compile_context>

<pallas_src>
import math

import jax
import jax.numpy as jnp
from jax.experimental import pallas as pl
from jax.experimental.pallas import tpu as pltpu

MAXR = 128   # matches `maxr` in the PyTorch module
RPAD = 128   # LoRA rank padded to a full 128-lane vreg width


# ----------------------------- small helpers ------------------------------ #

def _round_up(v, m):
    return ((v + m - 1) // m) * m


def _cdiv(a, b):
    return -(-a // b)


def _pick_tile(dim, pref, align):
    """Largest aligned tile <= pref that keeps padding waste under ~25%."""
    dim_r = _round_up(max(int(dim), 1), align)
    t = min(_round_up(pref, align), dim_r)
    n = _cdiv(dim_r, t)
    if n * t - dim_r > dim_r // 4:
        t = _round_up(_cdiv(dim_r, n), align)
    return t


def _vmem_limit_bytes():
    """Generation-aware scoped-VMEM budget (~80% of physical VMEM)."""
    cap = 64 * 1024 * 1024  # conservative fallback (v7x physical)
    try:
        info = pltpu.get_tpu_info()
        cap = int(getattr(info, "vmem_capacity_bytes", cap))
    except Exception:
        pass
    return int(cap * 0.8)


def _fused_footprint(tm, tn, tk, itemsize):
    """Double-buffered VMEM footprint of the fused kernel at given tiles."""
    return (2 * (tm * tk + tk * tn + tm * RPAD + RPAD * tn) * itemsize  # inputs x2
            + 2 * 1 * tn * 4                                            # bias (f32) x2
            + 2 * tm * tn * itemsize                                    # output x2
            + tm * tn * 4)                                              # f32 acc scratch


# -------------------------------- kernels --------------------------------- #

def _resr_kernel(x_ref, a_ref, o_ref, acc_ref):
    """resr = x @ A^T (A pre-transposed to (K, RPAD)). Grid: (M tiles, K tiles)."""
    k = pl.program_id(1)

    @pl.when(k == 0)
    def _():
        acc_ref[...] = jnp.zeros_like(acc_ref)

    acc_ref[...] += jnp.dot(x_ref[...], a_ref[...],
                            preferred_element_type=jnp.float32)

    @pl.when(k == pl.num_programs(1) - 1)
    def _():
        o_ref[...] = acc_ref[...].astype(o_ref.dtype)


def _fused_kernel(x_ref, w_ref, b_ref, resr_ref, bp_ref, o_ref, acc_ref):
    """y = x @ W + b + resr @ Bp.  Grid: (M tiles, N tiles, K tiles), K innermost.

    x_ref   : (tm, tk)    activations tile
    w_ref   : (tk, tn)    base weight, pre-transposed to (K, N)
    b_ref   : (1,  tn)    bias (f32)
    resr_ref: (tm, RPAD)  precomputed x @ A^T (k-invariant input)
    bp_ref  : (RPAD, tn)  folded Bp = scaling * (T^T + I) @ B^T, rank padded
    o_ref   : (tm, tn)    output tile
    acc_ref : (tm, tn)    f32 accumulator scratch (resident across k)
    """
    k = pl.program_id(2)

    @pl.when(k == 0)
    def _():
        # Bias and the (k-invariant) LoRA up-projection fold into the init, so the
        # inner loop is a single MXU push and the epilogue is just a cast+store.
        acc_ref[...] = b_ref[...] + jnp.dot(resr_ref[...], bp_ref[...],
                                            preferred_element_type=jnp.float32)

    acc_ref[...] += jnp.dot(x_ref[...], w_ref[...],
                            preferred_element_type=jnp.float32)

    @pl.when(k == pl.num_programs(2) - 1)
    def _():
        o_ref[...] = acc_ref[...].astype(o_ref.dtype)


def _fused_kernel_single_k(x_ref, w_ref, b_ref, resr_ref, bp_ref, o_ref):
    """Single-K-tile variant: no k loop, no scratch, no accumulator RMW (v5e win)."""
    acc = jnp.dot(x_ref[...], w_ref[...], preferred_element_type=jnp.float32)
    acc = acc + b_ref[...] + jnp.dot(resr_ref[...], bp_ref[...],
                                     preferred_element_type=jnp.float32)
    o_ref[...] = acc.astype(o_ref.dtype)


# ----------------------------- host-side glue ------------------------------ #

def prepare_lora_linear_params(base_w, base_b, lora_A_w, lora_lT_w, lora_mT_w,
                               lora_B_w, *, r, scaling, compute_dtype=None,
                               tm=512, tn=1024, tk=2048):
    """Weight-only preprocessing, hoisted out of the per-call forward (cacheable).

    Does: top_k over mT -> gather lT -> T; fold T and scaling into B; one-time
    host transposes to (K,N)/(K,RPAD)/(RPAD,N); tile selection with a
    generation-aware VMEM budget; padding of all weight operands.
    """
    out_features, in_features = base_w.shape
    dt = jnp.dtype(compute_dtype or base_w.dtype)
    N, K = out_features, in_features

    # --- the peft "refresh T" glue (tiny, plain JAX) ---
    # TODO(synk): jax.lax.top_k tie-breaking may differ from torch.topk on exact
    #             duplicate values in mT (weight-only behavioral divergence).
    kk = r * r
    _, idx = jax.lax.top_k(lora_mT_w.reshape(-1), kk)
    T_w = lora_lT_w.reshape(-1)[idx].reshape(r, r)

    # Fold: (resr @ T^T + resr) @ B^T * s  ==  resr @ [s * (T^T + I) @ B^T]  ==  resr @ Bp
    Bp = scaling * ((T_w.astype(jnp.float32).T + jnp.eye(r, dtype=jnp.float32))
                    @ lora_B_w.astype(jnp.float32).T)                      # (r, N)

    # --- tile preferences, shrunk (by halving, keeps 16/128 alignment) until the
    #     double-buffered footprint fits the per-generation VMEM budget ---
    limit = _vmem_limit_bytes()
    itemsize = dt.itemsize
    while (_fused_footprint(tm, tn, tk, itemsize) > limit
           and max(tm, tn, tk) > 256):
        if tk >= max(tn, tm):
            tk //= 2
        elif tn >= tm:
            tn //= 2
        else:
            tm //= 2

    # --- clamp to the problem with padding-waste awareness ---
    tn = _pick_tile(N, tn, 128)
    tk = _pick_tile(K, tk, 128)
    N_r = _round_up(N, 128)
    # v7x megacore: make sure there are >= 2 parallel N blocks so both TensorCores
    # get work even when M is tiny (decode-style calls).
    if _round_up(N, tn) // tn < 2 and N_r >= 256:
        tn = 128 * _cdiv(N_r // 128, 2)
    Np, Kp = _round_up(N, tn), _round_up(K, tk)

    def pad2(a, s0, s1):
        p0, p1 = s0 - a.shape[0], s1 - a.shape[1]
        return jnp.pad(a, ((0, p0), (0, p1))) if (p0 or p1) else a

    # One-time host transposes -> every in-kernel contraction is (m,k)x(k,n).
    w_t = pad2(base_w.T.astype(dt), Kp, Np)                         # (Kp, Np)
    a_t = pad2(lora_A_w.T.astype(dt), Kp, RPAD)                     # (Kp, 128)
    bp_t = pad2(Bp.astype(dt), RPAD, Np)                            # (128, Np)
    b_row = pad2(base_b.reshape(1, N).astype(jnp.float32), 1, Np)   # (1, Np)

    return dict(w_t=w_t, a_t=a_t, bp_t=bp_t, b_row=b_row,
                N=N, K=K, tn=tn, tk=tk, tm=tm, dtype=dt, vmem_limit=limit)


# --------------------------------- forward --------------------------------- #

def lora_linear_forward(x, params, *, tm=None):
    """Forward of the peft `Linear` (active adapter, no dropout, no DoRA)."""
    w_t, a_t, bp_t, b_row = (params["w_t"], params["a_t"],
                             params["bp_t"], params["b_row"])
    N, K, tn, tk = params["N"], params["K"], params["tn"], params["tk"]
    dt, limit = params["dtype"], params["vmem_limit"]

    lead = x.shape[:-1]
    M = math.prod(lead) if lead else 1
    x2 = x.reshape(M, K).astype(dt)

    Kp, Np = w_t.shape
    tm = _pick_tile(M, tm if tm is not None else params["tm"], 16)
    Mp = _round_up(M, tm)

    if Mp > M or Kp > K:
        x_p = jnp.pad(x2, ((0, Mp - M), (0, Kp - K)))
    else:
        x_p = x2

    # ---- pass 1: resr = x @ A^T, computed ONCE per M tile (not per N tile) ----
    resr = pl.pallas_call(
        _resr_kernel,
        out_shape=jax.ShapeDtypeStruct((Mp, RPAD), dt),
        grid_spec=pltpu.PrefetchScalarGridSpec(
            num_scalar_prefetch=0,
            grid=(Mp // tm, Kp // tk),
            in_specs=[
                pl.BlockSpec((tm, tk), lambda i, k: (i, k)),      # x
                pl.BlockSpec((tk, RPAD), lambda i, k: (k, 0)),    # A^T (K, r-pad)
            ],
            out_specs=pl.BlockSpec((tm, RPAD), lambda i, k: (i, 0)),
            scratch_shapes=[pltpu.VMEM((tm, RPAD), jnp.float32)],
        ),
        compiler_params=pltpu.CompilerParams(
            dimension_semantics=("parallel", "arbitrary"),
            vmem_limit_bytes=limit),
    )(x_p, a_t)

    # ---- pass 2: y = x @ W + b + resr @ Bp, fused tiled matmul ----
    if Kp == tk:
        # K fits a single tile: no reduction loop, no scratch, direct store.
        out_p = pl.pallas_call(
            _fused_kernel_single_k,
            out_shape=jax.ShapeDtypeStruct((Mp, Np), dt),
            grid_spec=pltpu.PrefetchScalarGridSpec(
                num_scalar_prefetch=0,
                grid=(Mp // tm, Np // tn),
                in_specs=[
                    pl.BlockSpec((tm, tk), lambda i, j: (i, 0)),     # x
                    pl.BlockSpec((tk, tn), lambda i, j: (0, j)),     # W^T (K, N)
                    pl.BlockSpec((1, tn), lambda i, j: (0, j)),      # bias
                    pl.BlockSpec((tm, RPAD), lambda i, j: (i, 0)),   # resr
                    pl.BlockSpec((RPAD, tn), lambda i, j: (0, j)),   # Bp (r, N)
                ],
                out_specs=pl.BlockSpec((tm, tn), lambda i, j: (i, j)),
            ),
            compiler_params=pltpu.CompilerParams(
                dimension_semantics=("parallel", "parallel"),
                vmem_limit_bytes=limit),
        )(x_p, w_t, b_row, resr, bp_t)
    else:
        out_p = pl.pallas_call(
            _fused_kernel,
            out_shape=jax.ShapeDtypeStruct((Mp, Np), dt),
            grid_spec=pltpu.PrefetchScalarGridSpec(
                num_scalar_prefetch=0,
                grid=(Mp // tm, Np // tn, Kp // tk),
                in_specs=[
                    pl.BlockSpec((tm, tk), lambda i, j, k: (i, k)),     # x
                    pl.BlockSpec((tk, tn), lambda i, j, k: (k, j)),     # W^T (K, N)
                    pl.BlockSpec((1, tn), lambda i, j, k: (0, j)),      # bias
                    pl.BlockSpec((tm, RPAD), lambda i, j, k: (i, 0)),   # resr
                    pl.BlockSpec((RPAD, tn), lambda i, j, k: (0, j)),   # Bp (r, N)
                ],
                out_specs=pl.BlockSpec((tm, tn), lambda i, j, k: (i, j)),
                scratch_shapes=[pltpu.VMEM((tm, tn), jnp.float32)],
            ),
            compiler_params=pltpu.CompilerParams(
                dimension_semantics=("parallel", "parallel", "arbitrary"),
                vmem_limit_bytes=limit),
        )(x_p, w_t, b_row, resr, bp_t)

    return out_p[:M, :N].reshape(*lead, N)


# -------------------------------- reference -------------------------------- #

def _reference_forward(x, base_w, base_b, lora_A_w, lora_lT_w, lora_mT_w,
                       lora_B_w, *, r, scaling):
    """Plain-JAX reference mirroring the PyTorch forward (default path)."""
    y = x @ base_w.T + base_b
    kk = r * r
    _, idx = jax.lax.top_k(lora_mT_w.reshape(-1), kk)
    T_w = lora_lT_w.reshape(-1)[idx].reshape(r, r)
    resr = x @ lora_A_w.T
    z = resr @ T_w.T + resr
    return y + (z @ lora_B_w.T) * scaling


# ----------------------------------- main ----------------------------------- #

if __name__ == "__main__":
    # small, module-consistent shapes
    batch, seq = 2, 8
    in_features, out_features = 32, 64
    r = 8
    lora_alpha = 16
    scaling = lora_alpha / r  # use_rslora=False

    key = jax.random.PRNGKey(0)
    ks = jax.random.split(key, 7)
    x = jax.random.normal(ks[0], (batch, seq, in_features), dtype=jnp.float32)

    # deterministic synthetic parameters (PyTorch layout: (out, in))
    base_w = jax.random.normal(ks[1], (out_features, in_features), jnp.float32) * 0.05
    base_b = jax.random.normal(ks[2], (out_features,), jnp.float32) * 0.05
    lora_A_w = jax.random.normal(ks[3], (r, in_features), jnp.float32) * 0.1
    lora_lT_w = jax.random.normal(ks[4], (MAXR, MAXR), jnp.float32) * 0.1
    lora_mT_w = jax.random.normal(ks[5], (MAXR, MAXR), jnp.float32) * 0.1
    # NOTE: real init zeros lora_B; use nonzero values so the LoRA path is exercised.
    lora_B_w = jax.random.normal(ks[6], (out_features, r), jnp.float32) * 0.1

    # Weight-only glue done ONCE (cache across forward calls when weights are fixed).
    params = prepare_lora_linear_params(
        base_w, base_b, lora_A_w, lora_lT_w, lora_mT_w, lora_B_w,
        r=r, scaling=scaling, compute_dtype=jnp.float32)

    out = lora_linear_forward(x, params)
    out = jax.block_until_ready(out)

    ref = _reference_forward(x, base_w, base_b, lora_A_w, lora_lT_w, lora_mT_w,
                             lora_B_w, r=r, scaling=scaling)
    assert out.shape == (batch, seq, out_features)
    assert jnp.allclose(out, ref, atol=1e-4, rtol=1e-4), \
        float(jnp.max(jnp.abs(out - ref)))

    # TODO(synk): dropout (p>0), DoRA, mixed-batch adapter_names, and the
    # merged/unmerge/disable-adapter paths are runtime-config branches not taken
    # by the default forward; they are not kernelized here.
    print("KERNEL_OK")
</pallas_src>

<mosaic_0001>
module attributes {stable_mosaic.version = 11 : i64} {
  func.func @_resr_kernel(%arg0: i32, %arg1: i32, %arg2: memref<16x128xf32, #tpu.memory_space<vmem>>, %arg3: memref<128x128xf32, #tpu.memory_space<vmem>>, %arg4: memref<16x128xf32, #tpu.memory_space<vmem>>, %arg5: memref<16x128xf32, #tpu.memory_space<vmem>>) attributes {dimension_semantics = [#tpu.dimension_semantics<parallel>, #tpu.dimension_semantics<arbitrary>], iteration_bounds = array<i64: 1, 1>, scalar_prefetch = 0 : i64, scratch_operands = 1 : i64, tpu.core_type = #tpu.core_type<tc>, window_params = [{transform_indices = @transform_0, window_bounds = array<i64: 16, 128>}, {transform_indices = @transform_1, window_bounds = array<i64: 128, 128>}, {transform_indices = @transform_2, window_bounds = array<i64: 16, 128>}]} {
    %c0_i32 = arith.constant 0 : i32
    %0 = arith.cmpi eq, %arg1, %c0_i32 : i32
    %1 = arith.extui %0 : i1 to i32
    %c0_i32_0 = arith.constant 0 : i32
    %2 = arith.cmpi ne, %1, %c0_i32_0 : i32
    scf.if %2 {
      %cst_10 = arith.constant 0.000000e+00 : f32
      %12 = vector.broadcast %cst_10 : f32 to vector<16x128xf32>
      %c0_11 = arith.constant 0 : index
      %c0_12 = arith.constant 0 : index
      %13 = vector.load %arg5[%c0_11, %c0_12] : memref<16x128xf32, #tpu.memory_space<vmem>>, vector<16x128xf32>
      tpu.vector_store %arg5[%c0_11, %c0_12], %12 {strides = array<i32>} : memref<16x128xf32, #tpu.memory_space<vmem>>, vector<16x128xf32>,
    } else {
    }
    %c0 = arith.constant 0 : index
    %c0_1 = arith.constant 0 : index
    %3 = vector.load %arg5[%c0, %c0_1] : memref<16x128xf32, #tpu.memory_space<vmem>>, vector<16x128xf32>
    %c0_2 = arith.constant 0 : index
    %c0_3 = arith.constant 0 : index
    %4 = vector.load %arg2[%c0_2, %c0_3] : memref<16x128xf32, #tpu.memory_space<vmem>>, vector<16x128xf32>
    %c0_4 = arith.constant 0 : index
    %c0_5 = arith.constant 0 : index
    %5 = vector.load %arg3[%c0_4, %c0_5] : memref<128x128xf32, #tpu.memory_space<vmem>>, vector<128x128xf32>
    %cst = arith.constant dense<0.000000e+00> : vector<16x128xf32>
    %6 = tpu.matmul %4, %5, %cst {dimension_numbers = #tpu.dot_dimension_numbers<[1], [0], [0], [1], [0, 0, 1, 1], [], []>} : vector<16x128xf32>, vector<128x128xf32>, vector<16x128xf32> -> vector<16x128xf32>
    %7 = arith.addf %3, %6 : vector<16x128xf32>
    %c0_6 = arith.constant 0 : index
    %c0_7 = arith.constant 0 : index
    %8 = vector.load %arg5[%c0_6, %c0_7] : memref<16x128xf32, #tpu.memory_space<vmem>>, vector<16x128xf32>
    tpu.vector_store %arg5[%c0_6, %c0_7], %7 {strides = array<i32>} : memref<16x128xf32, #tpu.memory_space<vmem>>, vector<16x128xf32>,
    %c0_i32_8 = arith.constant 0 : i32
    %9 = arith.cmpi eq, %arg1, %c0_i32_8 : i32
    %10 = arith.extui %9 : i1 to i32
    %c0_i32_9 = arith.constant 0 : i32
    %11 = arith.cmpi ne, %10, %c0_i32_9 : i32
    scf.if %11 {
      %c0_10 = arith.constant 0 : index
      %c0_11 = arith.constant 0 : index
      %12 = vector.load %arg5[%c0_10, %c0_11] : memref<16x128xf32, #tpu.memory_space<vmem>>, vector<16x128xf32>
      %c0_12 = arith.constant 0 : index
      %c0_13 = arith.constant 0 : index
      %13 = vector.load %arg4[%c0_12, %c0_13] : memref<16x128xf32, #tpu.memory_space<vmem>>, vector<16x128xf32>
      tpu.vector_store %arg4[%c0_12, %c0_13], %12 {strides = array<i32>} : memref<16x128xf32, #tpu.memory_space<vmem>>, vector<16x128xf32>,
    } else {
    }
    return
  }
  func.func @transform_0(%arg0: i32, %arg1: i32) -> (i32, i32) {
    %c0_i32 = arith.constant 0 : i32
    return %arg0, %arg1 : i32, i32
  }
  func.func @transform_1(%arg0: i32, %arg1: i32) -> (i32, i32) {
    %c0_i32 = arith.constant 0 : i32
    %c0_i32_0 = arith.constant 0 : i32
    return %arg1, %c0_i32 : i32, i32
  }
  func.func @transform_2(%arg0: i32, %arg1: i32) -> (i32, i32) {
    %c0_i32 = arith.constant 0 : i32
    %c0_i32_0 = arith.constant 0 : i32
    return %arg0, %c0_i32 : i32, i32
  }
}

</mosaic_0001>

<bundles_post_ra>
// kernel: tpu_custom_call.1
= control target key start
LH: loop header
LB: loop body
LE: loop exit
PB: predicated region body
PF: predicated region fallthrough
CT: control target
= control target key end

     0   :  { %7 = vsyncpa [#allocation4], 0  ;;  %s397_s0 = inlined_call_operand.hbm [shape: f32[16,128], index: 0, kind: input, shape index: {}]   ;;  %s398_s1 = inlined_call_operand.hbm [shape: f32[128,128], index: 1, kind: input, shape index: {}]   ;;  %s399_s2 = inlined_call_operand.hbm [shape: f32[16,128], index: 2, kind: output, shape index: {}]  }
   0x1   :  { %8 = vsyncpa [#allocation7], 0 }
   0x2   :  { %9 = vsyncpa [#allocation5], 0  ;;  %s332_s9 = smov [#allocation3]   ;;  %s260_s13 = scalar_lea.hbm %s397_s0, 256 }
   0x3   :  { %s15_s10 = sshll.u32 %s332_s9, 4  ;;  %p261_p0 = scmp.ne.s32.totalorder %s397_s0, %s260_s13  ;;  %s16_s10 = int_to_ptr.vmem [resolvable:$true] %s15_s10 }
   0x4   :  { %p264_p1 = scmp.lt.u32.totalorder %s260_s13, %s397_s0 }
   0x6   :  { %p266_p2 = pnand %p264_p1, %p261_p0 }
   0x8   :  { %269 = shalt.err (!%p266_p2)
}
   0x9   :  { %s270_s18 = scalar_lea.vmem %s16_s10, 256  ;;  %p275_p4 = scmp.lt.s32.totalorder %s16_s10, %s16_s10 }
   0xa   :  { %p271_p3 = scmp.ne.s32.totalorder %s16_s10, %s270_s18  ;;  %p276_p5 = scmp.lt.s32.totalorder %s270_s18, %s270_s18 }
   0xc   :  { %p277_p6 = por %p276_p5, %p275_p4 }
   0xe   :  { %p278_p7 = pnand %p277_p6, %p271_p3 }
  0x10   :  { %281 = shalt.err (!%p278_p7)
}
  0x11   :  { %s333_s19 = smov 128   ;;  %s334_s20 = smov 8  }
  0x12   :  { %21 = dma.hbm_to_vmem [thread:$0]  %s397_s0, 256, %s16_s10, [#allocation4], %s333_s19, %s333_s19, %s334_s20  }
  0x13   :  { %s335_s23 = smov [#allocation6]   ;;  %s282_s27 = scalar_lea.hbm %s398_s1, 2048 }
  0x14   :  { %s27_s24 = sshll.u32 %s335_s23, 4  ;;  %p283_p8 = scmp.ne.s32.totalorder %s398_s1, %s282_s27  ;;  %s28_s24 = int_to_ptr.vmem [resolvable:$true] %s27_s24 }
  0x15   :  { %p286_p9 = scmp.lt.u32.totalorder %s282_s27, %s398_s1 }
  0x17   :  { %p288_p10 = pnand %p286_p9, %p283_p8 }
  0x19   :  { %291 = shalt.err (!%p288_p10)
}
  0x1a   :  { %s292_s4 = scalar_lea.vmem %s28_s24, 2048  ;;  %p297_p12 = scmp.lt.s32.totalorder %s28_s24, %s28_s24 }
  0x1b   :  { %p293_p11 = scmp.ne.s32.totalorder %s28_s24, %s292_s4  ;;  %p298_p13 = scmp.lt.s32.totalorder %s292_s4, %s292_s4 }
  0x1d   :  { %p299_p0 = por %p298_p13, %p297_p12 }
  0x1f   :  { %p300_p1 = pnand %p299_p0, %p293_p11 }
  0x21   :  { %303 = shalt.err (!%p300_p1)
}
  0x22   :  { %33 = dma.hbm_to_vmem [thread:$0]  %s398_s1, 2048, %s28_s24, [#allocation7], %s333_s19, %s333_s19, %s334_s20  }
  0x23   :  { %326 = dma.done.wait [#allocation4], 256  }
  0x24   :  { %327 = vsyncadd [#allocation4], 4294967040 }
  0x25   :  { %328 = dma.done.wait [#allocation7], 2048  }
  0x26   :  { %329 = vsyncadd [#allocation7], 4294965248  ;;  %v50_v0 = vld [vmem:[#allocation6] sm:$0xff]  ;;  %v51_v1 = vld [vmem:[#allocation6 + $0x8] sm:$0xff]  ;;  %s336_s1 = smov [#allocation8]  }
  0x27   :  { %v52_v2 = vld [vmem:[#allocation6 + $0x10] sm:$0xff]  ;;  %v223_v3 = vpack.c.bf16 %v51_v1, %v50_v0  ;;  %v53_v4 = vld [vmem:[#allocation6 + $0x18] sm:$0xff]  ;;  %v54_v6 = vld [vmem:[#allocation6 + $0x20] sm:$0xff]  ;;  %s157_s6 = sshll.u32 %s336_s1, 4  ;;  %s158_s6 = int_to_ptr.vmem [resolvable:$true] %s157_s6 }
  0x28   :  { %v227_v5 = vpack.c.bf16 %v53_v4, %v52_v2  ;;  %v55_v7 = vld [vmem:[#allocation6 + $0x28] sm:$0xff]  ;;  %v48_v9 = vld [vmem:[#allocation3] sm:$0xff]  ;;  %v57_v11 = vld [vmem:[#allocation6 + $0x38] sm:$0xff]  ;;  %s304_s7 = scalar_lea.vmem %s158_s6, 256  ;;  %p309_p3 = scmp.lt.s32.totalorder %s158_s6, %s158_s6 }
  0x29   :  { %224 = vmatprep.subr.bf16.mxu0 %v223_v3  ;;  %v231_v8 = vpack.c.bf16 %v55_v7, %v54_v6  ;;  %v56_v10 = vld [vmem:[#allocation6 + $0x30] sm:$0xff]  ;;  %220 = vmatprep.mubr.f32.mxu0 %v48_v9  ;;  %v58_v13 = vld [vmem:[#allocation6 + $0x40] sm:$0xff]  ;;  %v59_v14 = vld [vmem:[#allocation6 + $0x48] sm:$0xff]  ;;  %p305_p2 = scmp.ne.s32.totalorder %s158_s6, %s304_s7  ;;  %p310_p4 = scmp.lt.s32.totalorder %s304_s7, %s304_s7 }
  0x2a   :  { %226 = vmatpush3.bf16.msra.mxu0 %v223_v3  ;;  %v235_v12 = vpack.c.bf16 %v57_v11, %v56_v10  ;;  %v239_v15 = vpack.c.bf16 %v59_v14, %v58_v13  ;;  %v60_v16 = vld [vmem:[#allocation6 + $0x50] sm:$0xff]  ;;  %v61_v17 = vld [vmem:[#allocation6 + $0x58] sm:$0xff]  ;;  %v62_v19 = vld [vmem:[#allocation6 + $0x60] sm:$0xff] }
  0x2b   :  { %228 = vmatprep.subr.bf16.mxu0 %v227_v5  ;;  %v243_v18 = vpack.c.bf16 %v61_v17, %v60_v16  ;;  %v63_v20 = vld [vmem:[#allocation6 + $0x68] sm:$0xff]  ;;  %v64_v22 = vld [vmem:[#allocation6 + $0x70] sm:$0xff]  ;;  %v65_v23 = vld [vmem:[#allocation6 + $0x78] sm:$0xff]  ;;  %p311_p5 = por %p310_p4, %p309_p3 }
  0x2c   :  { %v247_v21 = vpack.c.bf16 %v63_v20, %v62_v19  ;;  %v251_v24 = vpack.c.bf16 %v65_v23, %v64_v22  ;;  %v49_v25 = vld [vmem:[#allocation3 + $0x8] sm:$0xff] }
  0x2d   :  { %p312_p6 = pnand %p311_p5, %p305_p2 }
  0x2e   :  { %230 = vmatpush3.bf16.msra.mxu0 %v227_v5 }
  0x2f   :  { %232 = vmatprep.subr.bf16.mxu0 %v231_v8 }
  0x32   :  { %234 = vmatpush3.bf16.msra.mxu0 %v231_v8 }
  0x33   :  { %236 = vmatprep.subr.bf16.mxu0 %v235_v12 }
  0x36   :  { %238 = vmatpush3.bf16.msra.mxu0 %v235_v12 }
  0x37   :  { %240 = vmatprep.subr.bf16.mxu0 %v239_v15 }
  0x3a   :  { %242 = vmatpush3.bf16.msra.mxu0 %v239_v15 }
  0x3b   :  { %244 = vmatprep.subr.bf16.mxu0 %v243_v18 }
  0x3e   :  { %246 = vmatpush3.bf16.msra.mxu0 %v243_v18 }
  0x3f   :  { %248 = vmatprep.subr.bf16.mxu0 %v247_v21 }
  0x42   :  { %250 = vmatpush3.bf16.msra.mxu0 %v247_v21 }
  0x43   :  { %252 = vmatprep.subr.bf16.mxu0 %v251_v24 }
  0x46   :  { %254 = vmatpush3.bf16.msra.mxu0 %v251_v24 }
  0x49   :  { %221 = vmatmul.mubr.f32.vlgmr.msra.gmra.mrb[0].mxu0 %v49_v25 }
 0x11c   :  { %v222_v26 = vpop.f32.mrb[0].mxu0 }
 0x11d   :  { %151 = vst [vmem:[#allocation8 + $0x8] sm:$0xff] %v222_v26  ;;  %v132_v27 = vpop.f32.mrb[1].mxu0 }
 0x11e   :  { %150 = vst [vmem:[#allocation8] sm:$0xff] %v132_v27 }
 0x11f   :  { %315 = shalt.err (!%p312_p6)
}
 0x120   :  { %s316_s10 = scalar_lea.hbm %s399_s2, 256 }
 0x121   :  { %p317_p7 = scmp.ne.s32.totalorder %s399_s2, %s316_s10  ;;  %p320_p8 = scmp.lt.u32.totalorder %s316_s10, %s399_s2 }
 0x123   :  { %p322_p9 = pnand %p320_p8, %p317_p7 }
 0x125   :  { %325 = shalt.err (!%p322_p9)
}
 0x126   :  { %163 = dma.vmem_to_hbm [thread:$0]  %s158_s6, 256, %s399_s2, [#allocation5], %s333_s19, %s333_s19, %s334_s20  }
 0x127   :  { %330 = dma.done.wait [#allocation5], 256  }
 0x128   :  { %331 = vsyncadd [#allocation5], 4294967040 }
 0x129   :  { %167 = vsyncpa [#allocation4], 1 }
 0x12a   :  { %168 = vsyncpa [#allocation7], 1 }
 0x12b   :  { %169 = vsyncpa [#allocation5], 1 }

</bundles_post_ra>
